<compile_context>
chip_gen: v7x
topology: tpu7x:2x2x1
jax: 0.10.0
libtpu: 0.0.40
codegen_flags: <defaults>
</compile_context>

<pallas_src>
import jax
import jax.numpy as jnp
import numpy as np
from jax.experimental import pallas as pl
from jax.experimental.pallas import tpu as pltpu

D = 32          # dim_h
H = 2           # num_heads
DH = D // H     # head dim
EPS = 1e-5      # LayerNorm eps (PyTorch default)


def _layernorm(x, g, b):
    mu = jnp.mean(x, axis=-1, keepdims=True)
    var = jnp.mean((x - mu) ** 2, axis=-1, keepdims=True)
    return (x - mu) * jax.lax.rsqrt(var + EPS) * g + b


def gt_layer_kernel(x_ref, wqkv_ref, wo_ref, bqkv_ref, w1_ref, w2_ref,
                    vec_ref, bf1_ref, o_ref):
    # One grid step == Gb graphs (Gb * S rows).
    Gb, S, _ = x_ref.shape
    N = Gb * S

    x = x_ref[...].reshape(N, D)                 # f32 activations (residual path)
    xb = x.astype(jnp.bfloat16)                  # bf16 matmul operand

    wqkv = wqkv_ref[...]                         # [3, H, D, DH] bf16 (Wq scaled)
    wo = wo_ref[...]                             # [H, DH, D]    bf16
    bqkv = bqkv_ref[...]                         # [3, H, 1, DH] f32  (bq scaled)
    vec = vec_ref[...]                           # [6, D] f32, row-sliced params
    bf1 = bf1_ref[...]                           # [1, 2D] f32

    b_o = vec[0:1, :]
    g1 = vec[1:2, :]
    be1 = vec[2:3, :]
    bf2 = vec[3:4, :]
    g2 = vec[4:5, :]
    be2 = vec[5:6, :]

    # ---- nn.MultiheadAttention(q=k=v=h_dense), batch_first, no masking ----
    # Per-head in-projections (1/sqrt(DH) folded into Wq/bq at pack time),
    # then heads folded into the batch axis via a leading-axis concat so the
    # score / P@V einsums each run once over b = H*Gb graphs.
    qs, ks, vs = [], [], []
    for h in range(H):                           # static unroll, H == 2
        qh = jnp.dot(xb, wqkv[0, h], preferred_element_type=jnp.float32) + bqkv[0, h]
        kh = jnp.dot(xb, wqkv[1, h], preferred_element_type=jnp.float32) + bqkv[1, h]
        vh = jnp.dot(xb, wqkv[2, h], preferred_element_type=jnp.float32) + bqkv[2, h]
        qs.append(qh.astype(jnp.bfloat16).reshape(Gb, S, DH))
        ks.append(kh.astype(jnp.bfloat16).reshape(Gb, S, DH))
        vs.append(vh.astype(jnp.bfloat16).reshape(Gb, S, DH))
    qb = jnp.concatenate(qs, axis=0)             # [H*Gb, S, DH]
    kb = jnp.concatenate(ks, axis=0)
    vb = jnp.concatenate(vs, axis=0)

    s = jnp.einsum('bqd,bkd->bqk', qb, kb,
                   preferred_element_type=jnp.float32)          # [H*Gb, S, S]
    s = s - jnp.max(s, axis=-1, keepdims=True)
    p = jnp.exp(s)
    p = p * pl.reciprocal(jnp.sum(p, axis=-1, keepdims=True), approx=True)
    ctx = jnp.einsum('bqk,bkd->bqd', p.astype(jnp.bfloat16), vb,
                     preferred_element_type=jnp.float32)        # [H*Gb, S, DH]

    # Per-head O-projection accumulated (no lane concat of head outputs).
    attn = jnp.dot(ctx[0:Gb].reshape(N, DH).astype(jnp.bfloat16), wo[0],
                   preferred_element_type=jnp.float32)
    for h in range(1, H):
        attn = attn + jnp.dot(
            ctx[h * Gb:(h + 1) * Gb].reshape(N, DH).astype(jnp.bfloat16), wo[h],
            preferred_element_type=jnp.float32)
    attn = attn + b_o

    # ---- h_attn = dropout(h_attn) + h_in ; norm1_global (LayerNorm) ----
    h1 = _layernorm(attn + x, g1, be1)

    # ---- FFN 'Single': h = norm2_ffn(h + lin2(relu(lin1(h)))) ----
    z = jnp.maximum(
        jnp.dot(h1.astype(jnp.bfloat16), w1_ref[...],
                preferred_element_type=jnp.float32) + bf1, 0.0)
    ffn = jnp.dot(z.astype(jnp.bfloat16), w2_ref[...],
                  preferred_element_type=jnp.float32) + bf2
    out = _layernorm(h1 + ffn, g2, be2)

    o_ref[...] = out.reshape(Gb, S, D)


def pack_params(params):
    """Fold the attention scale into Wq/bq, split per head, pack lane-aligned."""
    (wq, bq, wk, bk, wv, bv, wo, bo,
     g1, be1, w1, bf1, w2, bf2, g2, be2) = params
    scale = 1.0 / (DH ** 0.5)

    def head_cols(w):                            # [D, D] -> [H, D, DH]
        return jnp.stack([w[:, h * DH:(h + 1) * DH] for h in range(H)], axis=0)

    def head_bias(b):                            # [1, D] -> [H, 1, DH]
        return jnp.stack([b[:, h * DH:(h + 1) * DH] for h in range(H)], axis=0)

    wqkv_h = jnp.stack([head_cols(wq * scale), head_cols(wk), head_cols(wv)],
                       axis=0).astype(jnp.bfloat16)              # [3, H, D, DH]
    wo_h = jnp.stack([wo[h * DH:(h + 1) * DH, :] for h in range(H)],
                     axis=0).astype(jnp.bfloat16)                # [H, DH, D]
    bqkv_h = jnp.stack([head_bias(bq * scale), head_bias(bk), head_bias(bv)],
                       axis=0).astype(jnp.float32)               # [3, H, 1, DH]
    vec = jnp.concatenate([bo, g1, be1, bf2, g2, be2],
                          axis=0).astype(jnp.float32)            # [6, D] row-sliced
    return (wqkv_h, wo_h, bqkv_h,
            w1.astype(jnp.bfloat16), w2.astype(jnp.bfloat16),
            vec, bf1.astype(jnp.float32))


def gt_layer(x, params, *, rows_per_step=4096):
    B, S, _ = x.shape
    wqkv_h, wo_h, bqkv_h, w1, w2, vec, bf1 = pack_params(params)

    # Graphs per grid step: large blocks (~rows_per_step rows) amortize the
    # ~0.35 us per-step overhead, but never more than ceil(B/2) graphs so the
    # "parallel" grid axis has >= 2 steps and spans both v7x TensorCores.
    Gb = max(1, rows_per_step // S)
    if B >= 2:
        Gb = min(Gb, pl.cdiv(B, 2))
    else:
        Gb = 1
    n_steps = pl.cdiv(B, Gb)
    B_pad = n_steps * Gb

    # Pad B up to a multiple of Gb (instead of shrinking Gb); padded graphs are
    # independent under per-graph attention, produce finite garbage, and are
    # sliced off below.
    if B_pad != B:
        x = jnp.concatenate(
            [x, jnp.zeros((B_pad - B, S, x.shape[-1]), x.dtype)], axis=0)

    out = pl.pallas_call(
        gt_layer_kernel,
        out_shape=jax.ShapeDtypeStruct((B_pad, S, D), jnp.float32),
        grid=(n_steps,),
        in_specs=[
            pl.BlockSpec((Gb, S, D), lambda g: (g, 0, 0)),
            pl.BlockSpec(wqkv_h.shape, lambda g: (0, 0, 0, 0)),
            pl.BlockSpec(wo_h.shape, lambda g: (0, 0, 0)),
            pl.BlockSpec(bqkv_h.shape, lambda g: (0, 0, 0, 0)),
            pl.BlockSpec(w1.shape, lambda g: (0, 0)),
            pl.BlockSpec(w2.shape, lambda g: (0, 0)),
            pl.BlockSpec(vec.shape, lambda g: (0, 0)),
            pl.BlockSpec(bf1.shape, lambda g: (0, 0)),
        ],
        out_specs=pl.BlockSpec((Gb, S, D), lambda g: (g, 0, 0)),
        compiler_params=pltpu.CompilerParams(
            dimension_semantics=("parallel",),
            vmem_limit_bytes=32 * 1024 * 1024),
    )(x, wqkv_h, wo_h, bqkv_h, w1, w2, vec, bf1)
    return out[:B]


def reference(x, params):
    (wq, bq, wk, bk, wv, bv, wo, bo,
     g1, be1, w1, bf1, w2, bf2, g2, be2) = params

    def ln(t, g, b):
        mu = jnp.mean(t, -1, keepdims=True)
        var = jnp.mean((t - mu) ** 2, -1, keepdims=True)
        return (t - mu) / jnp.sqrt(var + EPS) * g + b

    B, S, _ = x.shape
    q = x @ wq + bq
    k = x @ wk + bk
    v = x @ wv + bv
    qh = q.reshape(B, S, H, DH).transpose(0, 2, 1, 3)
    kh = k.reshape(B, S, H, DH).transpose(0, 2, 1, 3)
    vh = v.reshape(B, S, H, DH).transpose(0, 2, 1, 3)
    s = jnp.einsum('bhqd,bhkd->bhqk', qh, kh) / (DH ** 0.5)
    p = jax.nn.softmax(s, axis=-1)
    o = jnp.einsum('bhqk,bhkd->bhqd', p, vh).transpose(0, 2, 1, 3).reshape(B, S, D)
    attn = o @ wo + bo
    h1 = ln(attn + x, g1, be1)
    z = jax.nn.relu(h1 @ w1 + bf1)
    ffn = z @ w2 + bf2
    return ln(h1 + ffn, g2, be2)


if __name__ == "__main__":
    B, S = 2, 8
    key = jax.random.PRNGKey(0)
    ks = jax.random.split(key, 13)

    def w(k, shape, scale=0.1):
        return jax.random.normal(k, shape, jnp.float32) * scale

    x = jax.random.normal(ks[0], (B, S, D), jnp.float32)

    # Deterministic synthetic parameters (weights stored as (in, out)).
    wq, bq = w(ks[1], (D, D)), w(ks[2], (1, D))
    wk, bk = w(ks[3], (D, D)), w(ks[4], (1, D))
    wv, bv = w(ks[5], (D, D)), w(ks[6], (1, D))
    wo, bo = w(ks[7], (D, D)), w(ks[8], (1, D))
    g1, be1 = jnp.ones((1, D), jnp.float32), jnp.zeros((1, D), jnp.float32)
    w1, bf1 = w(ks[9], (D, 2 * D)), w(ks[10], (1, 2 * D))
    w2, bf2 = w(ks[11], (2 * D, D)), w(ks[12], (1, D))
    g2, be2 = jnp.ones((1, D), jnp.float32), jnp.zeros((1, D), jnp.float32)

    params = [wq, bq, wk, bk, wv, bv, wo, bo,
              g1, be1, w1, bf1, w2, bf2, g2, be2]

    out = jax.block_until_ready(gt_layer(x, params))
    ref = jax.block_until_ready(reference(x, params))
    np.testing.assert_allclose(np.asarray(out), np.asarray(ref),
                               atol=2e-2, rtol=2e-2)
    print("KERNEL_OK")
</pallas_src>

<mosaic_0001>
module attributes {stable_mosaic.version = 11 : i64} {
  func.func @gt_layer_kernel(%arg0: i32, %arg1: memref<1x8x32xf32, #tpu.memory_space<vmem>>, %arg2: memref<3x2x32x16xbf16, #tpu.memory_space<vmem>>, %arg3: memref<2x16x32xbf16, #tpu.memory_space<vmem>>, %arg4: memref<3x2x1x16xf32, #tpu.memory_space<vmem>>, %arg5: memref<32x64xbf16, #tpu.memory_space<vmem>>, %arg6: memref<64x32xbf16, #tpu.memory_space<vmem>>, %arg7: memref<6x32xf32, #tpu.memory_space<vmem>>, %arg8: memref<1x64xf32, #tpu.memory_space<vmem>>, %arg9: memref<1x8x32xf32, #tpu.memory_space<vmem>>) attributes {dimension_semantics = [#tpu.dimension_semantics<parallel>], iteration_bounds = array<i64: 2>, scalar_prefetch = 0 : i64, scratch_operands = 0 : i64, tpu.core_type = #tpu.core_type<tc>, window_params = [{transform_indices = @transform_0, window_bounds = array<i64: 1, 8, 32>}, {pipeline_mode = #tpu.pipeline_mode<synchronous>, transform_indices = @transform_1, window_bounds = array<i64: 3, 2, 32, 16>}, {pipeline_mode = #tpu.pipeline_mode<synchronous>, transform_indices = @transform_2, window_bounds = array<i64: 2, 16, 32>}, {pipeline_mode = #tpu.pipeline_mode<synchronous>, transform_indices = @transform_3, window_bounds = array<i64: 3, 2, 1, 16>}, {pipeline_mode = #tpu.pipeline_mode<synchronous>, transform_indices = @transform_4, window_bounds = array<i64: 32, 64>}, {pipeline_mode = #tpu.pipeline_mode<synchronous>, transform_indices = @transform_5, window_bounds = array<i64: 64, 32>}, {pipeline_mode = #tpu.pipeline_mode<synchronous>, transform_indices = @transform_6, window_bounds = array<i64: 6, 32>}, {pipeline_mode = #tpu.pipeline_mode<synchronous>, transform_indices = @transform_7, window_bounds = array<i64: 1, 64>}, {transform_indices = @transform_8, window_bounds = array<i64: 1, 8, 32>}]} {
    %c0 = arith.constant 0 : index
    %c0_0 = arith.constant 0 : index
    %c0_1 = arith.constant 0 : index
    %0 = vector.load %arg1[%c0, %c0_0, %c0_1] : memref<1x8x32xf32, #tpu.memory_space<vmem>>, vector<1x8x32xf32>
    %1 = vector.shape_cast %0 : vector<1x8x32xf32> to vector<8x32xf32>
    %2 = arith.truncf %1 : vector<8x32xf32> to vector<8x32xbf16>
    %c0_2 = arith.constant 0 : index
    %c0_3 = arith.constant 0 : index
    %c0_4 = arith.constant 0 : index
    %c0_5 = arith.constant 0 : index
    %3 = vector.load %arg2[%c0_2, %c0_3, %c0_4, %c0_5] : memref<3x2x32x16xbf16, #tpu.memory_space<vmem>>, vector<3x2x32x16xbf16>
    %c0_6 = arith.constant 0 : index
    %c0_7 = arith.constant 0 : index
    %c0_8 = arith.constant 0 : index
    %4 = vector.load %arg3[%c0_6, %c0_7, %c0_8] : memref<2x16x32xbf16, #tpu.memory_space<vmem>>, vector<2x16x32xbf16>
    %c0_9 = arith.constant 0 : index
    %c0_10 = arith.constant 0 : index
    %c0_11 = arith.constant 0 : index
    %c0_12 = arith.constant 0 : index
    %5 = vector.load %arg4[%c0_9, %c0_10, %c0_11, %c0_12] : memref<3x2x1x16xf32, #tpu.memory_space<vmem>>, vector<3x2x1x16xf32>
    %c0_13 = arith.constant 0 : index
    %c0_14 = arith.constant 0 : index
    %6 = vector.load %arg7[%c0_13, %c0_14] : memref<6x32xf32, #tpu.memory_space<vmem>>, vector<6x32xf32>
    %c0_15 = arith.constant 0 : index
    %c0_16 = arith.constant 0 : index
    %7 = vector.load %arg8[%c0_15, %c0_16] : memref<1x64xf32, #tpu.memory_space<vmem>>, vector<1x64xf32>
    %8 = vector.extract_strided_slice %6 {offsets = [0, 0], sizes = [1, 32], strides = [1, 1]} : vector<6x32xf32> to vector<1x32xf32>
    %9 = vector.extract_strided_slice %6 {offsets = [1, 0], sizes = [1, 32], strides = [1, 1]} : vector<6x32xf32> to vector<1x32xf32>
    %10 = vector.extract_strided_slice %6 {offsets = [2, 0], sizes = [1, 32], strides = [1, 1]} : vector<6x32xf32> to vector<1x32xf32>
    %11 = vector.extract_strided_slice %6 {offsets = [3, 0], sizes = [1, 32], strides = [1, 1]} : vector<6x32xf32> to vector<1x32xf32>
    %12 = vector.extract_strided_slice %6 {offsets = [4, 0], sizes = [1, 32], strides = [1, 1]} : vector<6x32xf32> to vector<1x32xf32>
    %13 = vector.extract_strided_slice %6 {offsets = [5, 0], sizes = [1, 32], strides = [1, 1]} : vector<6x32xf32> to vector<1x32xf32>
    %14 = vector.extract_strided_slice %3 {offsets = [0, 0, 0, 0], sizes = [1, 1, 32, 16], strides = [1, 1, 1, 1]} : vector<3x2x32x16xbf16> to vector<1x1x32x16xbf16>
    %15 = vector.shape_cast %14 : vector<1x1x32x16xbf16> to vector<32x16xbf16>
    %cst = arith.constant dense<0.000000e+00> : vector<8x16xf32>
    %16 = tpu.matmul %2, %15, %cst {dimension_numbers = #tpu.dot_dimension_numbers<[1], [0], [0], [1], [0, 0, 1, 1], [], []>} : vector<8x32xbf16>, vector<32x16xbf16>, vector<8x16xf32> -> vector<8x16xf32>
    %17 = vector.extract_strided_slice %5 {offsets = [0, 0, 0, 0], sizes = [1, 1, 1, 16], strides = [1, 1, 1, 1]} : vector<3x2x1x16xf32> to vector<1x1x1x16xf32>
    %18 = vector.shape_cast %17 : vector<1x1x1x16xf32> to vector<1x16xf32>
    %19 = vector.broadcast %18 : vector<1x16xf32> to vector<8x16xf32>
    %20 = arith.addf %16, %19 : vector<8x16xf32>
    %21 = vector.extract_strided_slice %3 {offsets = [1, 0, 0, 0], sizes = [1, 1, 32, 16], strides = [1, 1, 1, 1]} : vector<3x2x32x16xbf16> to vector<1x1x32x16xbf16>
    %22 = vector.shape_cast %21 : vector<1x1x32x16xbf16> to vector<32x16xbf16>
    %cst_17 = arith.constant dense<0.000000e+00> : vector<8x16xf32>
    %23 = tpu.matmul %2, %22, %cst_17 {dimension_numbers = #tpu.dot_dimension_numbers<[1], [0], [0], [1], [0, 0, 1, 1], [], []>} : vector<8x32xbf16>, vector<32x16xbf16>, vector<8x16xf32> -> vector<8x16xf32>
    %24 = vector.extract_strided_slice %5 {offsets = [1, 0, 0, 0], sizes = [1, 1, 1, 16], strides = [1, 1, 1, 1]} : vector<3x2x1x16xf32> to vector<1x1x1x16xf32>
    %25 = vector.shape_cast %24 : vector<1x1x1x16xf32> to vector<1x16xf32>
    %26 = vector.broadcast %25 : vector<1x16xf32> to vector<8x16xf32>
    %27 = arith.addf %23, %26 : vector<8x16xf32>
    %28 = vector.extract_strided_slice %3 {offsets = [2, 0, 0, 0], sizes = [1, 1, 32, 16], strides = [1, 1, 1, 1]} : vector<3x2x32x16xbf16> to vector<1x1x32x16xbf16>
    %29 = vector.shape_cast %28 : vector<1x1x32x16xbf16> to vector<32x16xbf16>
    %cst_18 = arith.constant dense<0.000000e+00> : vector<8x16xf32>
    %30 = tpu.matmul %2, %29, %cst_18 {dimension_numbers = #tpu.dot_dimension_numbers<[1], [0], [0], [1], [0, 0, 1, 1], [], []>} : vector<8x32xbf16>, vector<32x16xbf16>, vector<8x16xf32> -> vector<8x16xf32>
    %31 = vector.extract_strided_slice %5 {offsets = [2, 0, 0, 0], sizes = [1, 1, 1, 16], strides = [1, 1, 1, 1]} : vector<3x2x1x16xf32> to vector<1x1x1x16xf32>
    %32 = vector.shape_cast %31 : vector<1x1x1x16xf32> to vector<1x16xf32>
    %33 = vector.broadcast %32 : vector<1x16xf32> to vector<8x16xf32>
    %34 = arith.addf %30, %33 : vector<8x16xf32>
    %35 = arith.truncf %20 : vector<8x16xf32> to vector<8x16xbf16>
    %36 = vector.shape_cast %35 : vector<8x16xbf16> to vector<1x8x16xbf16>
    %37 = arith.truncf %27 : vector<8x16xf32> to vector<8x16xbf16>
    %38 = vector.shape_cast %37 : vector<8x16xbf16> to vector<1x8x16xbf16>
    %39 = arith.truncf %34 : vector<8x16xf32> to vector<8x16xbf16>
    %40 = vector.shape_cast %39 : vector<8x16xbf16> to vector<1x8x16xbf16>
    %41 = vector.extract_strided_slice %3 {offsets = [0, 1, 0, 0], sizes = [1, 1, 32, 16], strides = [1, 1, 1, 1]} : vector<3x2x32x16xbf16> to vector<1x1x32x16xbf16>
    %42 = vector.shape_cast %41 : vector<1x1x32x16xbf16> to vector<32x16xbf16>
    %cst_19 = arith.constant dense<0.000000e+00> : vector<8x16xf32>
    %43 = tpu.matmul %2, %42, %cst_19 {dimension_numbers = #tpu.dot_dimension_numbers<[1], [0], [0], [1], [0, 0, 1, 1], [], []>} : vector<8x32xbf16>, vector<32x16xbf16>, vector<8x16xf32> -> vector<8x16xf32>
    %44 = vector.extract_strided_slice %5 {offsets = [0, 1, 0, 0], sizes = [1, 1, 1, 16], strides = [1, 1, 1, 1]} : vector<3x2x1x16xf32> to vector<1x1x1x16xf32>
    %45 = vector.shape_cast %44 : vector<1x1x1x16xf32> to vector<1x16xf32>
    %46 = vector.broadcast %45 : vector<1x16xf32> to vector<8x16xf32>
    %47 = arith.addf %43, %46 : vector<8x16xf32>
    %48 = vector.extract_strided_slice %3 {offsets = [1, 1, 0, 0], sizes = [1, 1, 32, 16], strides = [1, 1, 1, 1]} : vector<3x2x32x16xbf16> to vector<1x1x32x16xbf16>
    %49 = vector.shape_cast %48 : vector<1x1x32x16xbf16> to vector<32x16xbf16>
    %cst_20 = arith.constant dense<0.000000e+00> : vector<8x16xf32>
    %50 = tpu.matmul %2, %49, %cst_20 {dimension_numbers = #tpu.dot_dimension_numbers<[1], [0], [0], [1], [0, 0, 1, 1], [], []>} : vector<8x32xbf16>, vector<32x16xbf16>, vector<8x16xf32> -> vector<8x16xf32>
    %51 = vector.extract_strided_slice %5 {offsets = [1, 1, 0, 0], sizes = [1, 1, 1, 16], strides = [1, 1, 1, 1]} : vector<3x2x1x16xf32> to vector<1x1x1x16xf32>
    %52 = vector.shape_cast %51 : vector<1x1x1x16xf32> to vector<1x16xf32>
    %53 = vector.broadcast %52 : vector<1x16xf32> to vector<8x16xf32>
    %54 = arith.addf %50, %53 : vector<8x16xf32>
    %55 = vector.extract_strided_slice %3 {offsets = [2, 1, 0, 0], sizes = [1, 1, 32, 16], strides = [1, 1, 1, 1]} : vector<3x2x32x16xbf16> to vector<1x1x32x16xbf16>
    %56 = vector.shape_cast %55 : vector<1x1x32x16xbf16> to vector<32x16xbf16>
    %cst_21 = arith.constant dense<0.000000e+00> : vector<8x16xf32>
    %57 = tpu.matmul %2, %56, %cst_21 {dimension_numbers = #tpu.dot_dimension_numbers<[1], [0], [0], [1], [0, 0, 1, 1], [], []>} : vector<8x32xbf16>, vector<32x16xbf16>, vector<8x16xf32> -> vector<8x16xf32>
    %58 = vector.extract_strided_slice %5 {offsets = [2, 1, 0, 0], sizes = [1, 1, 1, 16], strides = [1, 1, 1, 1]} : vector<3x2x1x16xf32> to vector<1x1x1x16xf32>
    %59 = vector.shape_cast %58 : vector<1x1x1x16xf32> to vector<1x16xf32>
    %60 = vector.broadcast %59 : vector<1x16xf32> to vector<8x16xf32>
    %61 = arith.addf %57, %60 : vector<8x16xf32>
    %62 = arith.truncf %47 : vector<8x16xf32> to vector<8x16xbf16>
    %63 = vector.shape_cast %62 : vector<8x16xbf16> to vector<1x8x16xbf16>
    %64 = arith.truncf %54 : vector<8x16xf32> to vector<8x16xbf16>
    %65 = vector.shape_cast %64 : vector<8x16xbf16> to vector<1x8x16xbf16>
    %66 = arith.truncf %61 : vector<8x16xf32> to vector<8x16xbf16>
    %67 = vector.shape_cast %66 : vector<8x16xbf16> to vector<1x8x16xbf16>
    %68 = tpu.concatenate %36, %63 in 0 : vector<1x8x16xbf16>, vector<1x8x16xbf16> -> vector<2x8x16xbf16>
    %69 = tpu.concatenate %38, %65 in 0 : vector<1x8x16xbf16>, vector<1x8x16xbf16> -> vector<2x8x16xbf16>
    %70 = tpu.concatenate %40, %67 in 0 : vector<1x8x16xbf16>, vector<1x8x16xbf16> -> vector<2x8x16xbf16>
    "tpu.trace_start"() <{level = 10 : i32, message = "bqd,bkd->bqk"}> : () -> ()
    %cst_22 = arith.constant dense<0.000000e+00> : vector<2x8x8xf32>
    %71 = tpu.matmul %68, %69, %cst_22 {dimension_numbers = #tpu.dot_dimension_numbers<[2], [2], [1], [1], [0, 0, 0, 1, 1, 1], [0], [0]>} : vector<2x8x16xbf16>, vector<2x8x16xbf16>, vector<2x8x8xf32> -> vector<2x8x8xf32>
    "tpu.trace_stop"() : () -> ()
    %cst_23 = arith.constant dense<0xFF800000> : vector<2x8xf32>
    %72 = vector.multi_reduction <maximumf>, %71, %cst_23 [2] : vector<2x8x8xf32> to vector<2x8xf32>
    %73 = vector.shape_cast %72 : vector<2x8xf32> to vector<2x8x1xf32>
    %74 = vector.broadcast %73 : vector<2x8x1xf32> to vector<2x8x8xf32>
    %75 = arith.subf %71, %74 : vector<2x8x8xf32>
    %76 = math.exp %75 : vector<2x8x8xf32>
    %cst_24 = arith.constant dense<0.000000e+00> : vector<2x8xf32>
    %77 = vector.multi_reduction <add>, %76, %cst_24 [2] : vector<2x8x8xf32> to vector<2x8xf32>
    %78 = vector.shape_cast %77 : vector<2x8xf32> to vector<2x8x1xf32>
    %79 = tpu.reciprocal %78 {approx = true} : vector<2x8x1xf32> -> vector<2x8x1xf32>
    %80 = vector.broadcast %79 : vector<2x8x1xf32> to vector<2x8x8xf32>
    %81 = arith.mulf %76, %80 : vector<2x8x8xf32>
    %82 = arith.truncf %81 : vector<2x8x8xf32> to vector<2x8x8xbf16>
    "tpu.trace_start"() <{level = 10 : i32, message = "bqk,bkd->bqd"}> : () -> ()
    %cst_25 = arith.constant dense<0.000000e+00> : vector<2x8x16xf32>
    %83 = tpu.matmul %82, %70, %cst_25 {dimension_numbers = #tpu.dot_dimension_numbers<[2], [1], [1], [2], [0, 0, 0, 1, 1, 2], [0], [0]>} : vector<2x8x8xbf16>, vector<2x8x16xbf16>, vector<2x8x16xf32> -> vector<2x8x16xf32>
    "tpu.trace_stop"() : () -> ()
    %84 = vector.extract_strided_slice %83 {offsets = [0, 0, 0], sizes = [1, 8, 16], strides = [1, 1, 1]} : vector<2x8x16xf32> to vector<1x8x16xf32>
    %85 = vector.shape_cast %84 : vector<1x8x16xf32> to vector<8x16xf32>
    %86 = arith.truncf %85 : vector<8x16xf32> to vector<8x16xbf16>
    %87 = vector.extract_strided_slice %4 {offsets = [0, 0, 0], sizes = [1, 16, 32], strides = [1, 1, 1]} : vector<2x16x32xbf16> to vector<1x16x32xbf16>
    %88 = vector.shape_cast %87 : vector<1x16x32xbf16> to vector<16x32xbf16>
    %cst_26 = arith.constant dense<0.000000e+00> : vector<8x32xf32>
    %89 = tpu.matmul %86, %88, %cst_26 {dimension_numbers = #tpu.dot_dimension_numbers<[1], [0], [0], [1], [0, 0, 1, 1], [], []>} : vector<8x16xbf16>, vector<16x32xbf16>, vector<8x32xf32> -> vector<8x32xf32>
    %90 = vector.extract_strided_slice %83 {offsets = [1, 0, 0], sizes = [1, 8, 16], strides = [1, 1, 1]} : vector<2x8x16xf32> to vector<1x8x16xf32>
    %91 = vector.shape_cast %90 : vector<1x8x16xf32> to vector<8x16xf32>
    %92 = arith.truncf %91 : vector<8x16xf32> to vector<8x16xbf16>
    %93 = vector.extract_strided_slice %4 {offsets = [1, 0, 0], sizes = [1, 16, 32], strides = [1, 1, 1]} : vector<2x16x32xbf16> to vector<1x16x32xbf16>
    %94 = vector.shape_cast %93 : vector<1x16x32xbf16> to vector<16x32xbf16>
    %cst_27 = arith.constant dense<0.000000e+00> : vector<8x32xf32>
    %95 = tpu.matmul %92, %94, %cst_27 {dimension_numbers = #tpu.dot_dimension_numbers<[1], [0], [0], [1], [0, 0, 1, 1], [], []>} : vector<8x16xbf16>, vector<16x32xbf16>, vector<8x32xf32> -> vector<8x32xf32>
    %96 = arith.addf %89, %95 : vector<8x32xf32>
    %97 = vector.broadcast %8 : vector<1x32xf32> to vector<8x32xf32>
    %98 = arith.addf %96, %97 : vector<8x32xf32>
    %99 = arith.addf %98, %1 : vector<8x32xf32>
    %cst_28 = arith.constant dense<0.000000e+00> : vector<8xf32>
    %100 = vector.multi_reduction <add>, %99, %cst_28 [1] : vector<8x32xf32> to vector<8xf32>
    %101 = vector.shape_cast %100 : vector<8xf32> to vector<8x1xf32>
    %cst_29 = arith.constant 3.200000e+01 : f32
    %102 = vector.broadcast %cst_29 : f32 to vector<8x1xf32>
    %103 = arith.divf %101, %102 : vector<8x1xf32>
    %104 = vector.broadcast %103 : vector<8x1xf32> to vector<8x32xf32>
    %105 = arith.subf %99, %104 : vector<8x32xf32>
    %106 = arith.mulf %105, %105 : vector<8x32xf32>
    %cst_30 = arith.constant dense<0.000000e+00> : vector<8xf32>
    %107 = vector.multi_reduction <add>, %106, %cst_30 [1] : vector<8x32xf32> to vector<8xf32>
    %108 = vector.shape_cast %107 : vector<8xf32> to vector<8x1xf32>
    %cst_31 = arith.constant 3.200000e+01 : f32
    %109 = vector.broadcast %cst_31 : f32 to vector<8x1xf32>
    %110 = arith.divf %108, %109 : vector<8x1xf32>
    %111 = vector.broadcast %103 : vector<8x1xf32> to vector<8x32xf32>
    %112 = arith.subf %99, %111 : vector<8x32xf32>
    %cst_32 = arith.constant 9.99999974E-6 : f32
    %113 = vector.broadcast %cst_32 : f32 to vector<8x1xf32>
    %114 = arith.addf %110, %113 : vector<8x1xf32>
    %115 = math.rsqrt %114 : vector<8x1xf32>
    %116 = vector.broadcast %115 : vector<8x1xf32> to vector<8x32xf32>
    %117 = arith.mulf %112, %116 : vector<8x32xf32>
    %118 = vector.broadcast %9 : vector<1x32xf32> to vector<8x32xf32>
    %119 = arith.mulf %117, %118 : vector<8x32xf32>
    %120 = vector.broadcast %10 : vector<1x32xf32> to vector<8x32xf32>
    %121 = arith.addf %119, %120 : vector<8x32xf32>
    %122 = arith.truncf %121 : vector<8x32xf32> to vector<8x32xbf16>
    %c0_33 = arith.constant 0 : index
    %c0_34 = arith.constant 0 : index
    %123 = vector.load %arg5[%c0_33, %c0_34] : memref<32x64xbf16, #tpu.memory_space<vmem>>, vector<32x64xbf16>
    %cst_35 = arith.constant dense<0.000000e+00> : vector<8x64xf32>
    %124 = tpu.matmul %122, %123, %cst_35 {dimension_numbers = #tpu.dot_dimension_numbers<[1], [0], [0], [1], [0, 0, 1, 1], [], []>} : vector<8x32xbf16>, vector<32x64xbf16>, vector<8x64xf32> -> vector<8x64xf32>
    %125 = vector.broadcast %7 : vector<1x64xf32> to vector<8x64xf32>
    %126 = arith.addf %124, %125 : vector<8x64xf32>
    %cst_36 = arith.constant 0.000000e+00 : f32
    %127 = vector.broadcast %cst_36 : f32 to vector<8x64xf32>
    %128 = arith.maximumf %126, %127 : vector<8x64xf32>
    %129 = arith.truncf %128 : vector<8x64xf32> to vector<8x64xbf16>
    %c0_37 = arith.constant 0 : index
    %c0_38 = arith.constant 0 : index
    %130 = vector.load %arg6[%c0_37, %c0_38] : memref<64x32xbf16, #tpu.memory_space<vmem>>, vector<64x32xbf16>
    %cst_39 = arith.constant dense<0.000000e+00> : vector<8x32xf32>
    %131 = tpu.matmul %129, %130, %cst_39 {dimension_numbers = #tpu.dot_dimension_numbers<[1], [0], [0], [1], [0, 0, 1, 1], [], []>} : vector<8x64xbf16>, vector<64x32xbf16>, vector<8x32xf32> -> vector<8x32xf32>
    %132 = vector.broadcast %11 : vector<1x32xf32> to vector<8x32xf32>
    %133 = arith.addf %131, %132 : vector<8x32xf32>
    %134 = arith.addf %121, %133 : vector<8x32xf32>
    %cst_40 = arith.constant dense<0.000000e+00> : vector<8xf32>
    %135 = vector.multi_reduction <add>, %134, %cst_40 [1] : vector<8x32xf32> to vector<8xf32>
    %136 = vector.shape_cast %135 : vector<8xf32> to vector<8x1xf32>
    %cst_41 = arith.constant 3.200000e+01 : f32
    %137 = vector.broadcast %cst_41 : f32 to vector<8x1xf32>
    %138 = arith.divf %136, %137 : vector<8x1xf32>
    %139 = vector.broadcast %138 : vector<8x1xf32> to vector<8x32xf32>
    %140 = arith.subf %134, %139 : vector<8x32xf32>
    %141 = arith.mulf %140, %140 : vector<8x32xf32>
    %cst_42 = arith.constant dense<0.000000e+00> : vector<8xf32>
    %142 = vector.multi_reduction <add>, %141, %cst_42 [1] : vector<8x32xf32> to vector<8xf32>
    %143 = vector.shape_cast %142 : vector<8xf32> to vector<8x1xf32>
    %cst_43 = arith.constant 3.200000e+01 : f32
    %144 = vector.broadcast %cst_43 : f32 to vector<8x1xf32>
    %145 = arith.divf %143, %144 : vector<8x1xf32>
    %146 = vector.broadcast %138 : vector<8x1xf32> to vector<8x32xf32>
    %147 = arith.subf %134, %146 : vector<8x32xf32>
    %cst_44 = arith.constant 9.99999974E-6 : f32
    %148 = vector.broadcast %cst_44 : f32 to vector<8x1xf32>
    %149 = arith.addf %145, %148 : vector<8x1xf32>
    %150 = math.rsqrt %149 : vector<8x1xf32>
    %151 = vector.broadcast %150 : vector<8x1xf32> to vector<8x32xf32>
    %152 = arith.mulf %147, %151 : vector<8x32xf32>
    %153 = vector.broadcast %12 : vector<1x32xf32> to vector<8x32xf32>
    %154 = arith.mulf %152, %153 : vector<8x32xf32>
    %155 = vector.broadcast %13 : vector<1x32xf32> to vector<8x32xf32>
    %156 = arith.addf %154, %155 : vector<8x32xf32>
    %157 = vector.shape_cast %156 : vector<8x32xf32> to vector<1x8x32xf32>
    %c0_45 = arith.constant 0 : index
    %c0_46 = arith.constant 0 : index
    %c0_47 = arith.constant 0 : index
    %158 = vector.load %arg9[%c0_45, %c0_46, %c0_47] : memref<1x8x32xf32, #tpu.memory_space<vmem>>, vector<1x8x32xf32>
    tpu.vector_store %arg9[%c0_45, %c0_46, %c0_47], %157 {strides = array<i32>} : memref<1x8x32xf32, #tpu.memory_space<vmem>>, vector<1x8x32xf32>,
    return
  }
  func.func @transform_0(%arg0: i32) -> (i32, i32, i32) {
    %c0_i32 = arith.constant 0 : i32
    %c0_i32_0 = arith.constant 0 : i32
    %c0_i32_1 = arith.constant 0 : i32
    return %arg0, %c0_i32, %c0_i32_0 : i32, i32, i32
  }
  func.func @transform_1(%arg0: i32) -> (i32, i32, i32, i32) {
    %c0_i32 = arith.constant 0 : i32
    %c0_i32_0 = arith.constant 0 : i32
    %c0_i32_1 = arith.constant 0 : i32
    %c0_i32_2 = arith.constant 0 : i32
    %c0_i32_3 = arith.constant 0 : i32
    return %c0_i32, %c0_i32_0, %c0_i32_1, %c0_i32_2 : i32, i32, i32, i32
  }
  func.func @transform_2(%arg0: i32) -> (i32, i32, i32) {
    %c0_i32 = arith.constant 0 : i32
    %c0_i32_0 = arith.constant 0 : i32
    %c0_i32_1 = arith.constant 0 : i32
    %c0_i32_2 = arith.constant 0 : i32
    return %c0_i32, %c0_i32_0, %c0_i32_1 : i32, i32, i32
  }
  func.func @transform_3(%arg0: i32) -> (i32, i32, i32, i32) {
    %c0_i32 = arith.constant 0 : i32
    %c0_i32_0 = arith.constant 0 : i32
    %c0_i32_1 = arith.constant 0 : i32
    %c0_i32_2 = arith.constant 0 : i32
    %c0_i32_3 = arith.constant 0 : i32
    return %c0_i32, %c0_i32_0, %c0_i32_1, %c0_i32_2 : i32, i32, i32, i32
  }
  func.func @transform_4(%arg0: i32) -> (i32, i32) {
    %c0_i32 = arith.constant 0 : i32
    %c0_i32_0 = arith.constant 0 : i32
    %c0_i32_1 = arith.constant 0 : i32
    return %c0_i32, %c0_i32_0 : i32, i32
  }
  func.func @transform_5(%arg0: i32) -> (i32, i32) {
    %c0_i32 = arith.constant 0 : i32
    %c0_i32_0 = arith.constant 0 : i32
    %c0_i32_1 = arith.constant 0 : i32
    return %c0_i32, %c0_i32_0 : i32, i32
  }
  func.func @transform_6(%arg0: i32) -> (i32, i32) {
    %c0_i32 = arith.constant 0 : i32
    %c0_i32_0 = arith.constant 0 : i32
    %c0_i32_1 = arith.constant 0 : i32
    return %c0_i32, %c0_i32_0 : i32, i32
  }
  func.func @transform_7(%arg0: i32) -> (i32, i32) {
    %c0_i32 = arith.constant 0 : i32
    %c0_i32_0 = arith.constant 0 : i32
    %c0_i32_1 = arith.constant 0 : i32
    return %c0_i32, %c0_i32_0 : i32, i32
  }
  func.func @transform_8(%arg0: i32) -> (i32, i32, i32) {
    %c0_i32 = arith.constant 0 : i32
    %c0_i32_0 = arith.constant 0 : i32
    %c0_i32_1 = arith.constant 0 : i32
    return %arg0, %c0_i32, %c0_i32_0 : i32, i32, i32
  }
}

</mosaic_0001>

<bundles_post_ra>
// kernel: tpu_custom_call.1
= control target key start
LH: loop header
LB: loop body
LE: loop exit
PB: predicated region body
PF: predicated region fallthrough
CT: control target
= control target key end

     0   :  { %13 = vsyncpa [#allocation3], 0  ;;  %s1946_s0 = inlined_call_operand.vmem [shape: f32[2,8,32], index: 0, kind: input, shape index: {}]   ;;  %s1947_s1 = inlined_call_operand.vmem [shape: bf16[3,2,32,16], index: 1, kind: input, shape index: {}]   ;;  %s1948_s2 = inlined_call_operand.vmem [shape: bf16[2,16,32], index: 2, kind: input, shape index: {}]   ;;  %s1949_s3 = inlined_call_operand.vmem [shape: f32[3,2,1,16], index: 3, kind: input, shape index: {}]   ;;  %s1950_s4 = inlined_call_operand.vmem [shape: bf16[32,64], index: 4, kind: input, shape index: {}]   ;;  %s1951_s5 = inlined_call_operand.vmem [shape: bf16[64,32], index: 5, kind: input, shape index: {}]   ;;  %s1952_s6 = inlined_call_operand.vmem [shape: f32[6,32], index: 6, kind: input, shape index: {}]   ;;  %s1953_s7 = inlined_call_operand.vmem [shape: f32[1,64], index: 7, kind: input, shape index: {}]   ;;  %s1954_s8 = inlined_call_operand.hbm [shape: f32[2,8,32], index: 8, kind: output, shape index: {}]  }
   0x1   :  { %15 = vsyncpa [#allocation3 + $0x1], 0  ;;  %s1663_s27 = smov 0   ;;  %s1665_s28 = smov 0  }
   0x2   :  { %s1667_s29 = smov 0   ;;  %s1669_s30 = smov 0  }
   0x3 LB: > { %s1684_s9 = sadd.s32 4294967295, %s1613_s30   ;;  %s1285_s10 = sadd.s32 4294967294, %s1613_s30   ;;  %s1613_s30 = sphi %s1669_s30, %s1960_s30   ;;  %s1609_s29 = sphi %s1667_s29, %s1959_s29   ;;  %s1605_s28 = sphi %s1665_s28, %s1958_s28   ;;  %s1601_s27 = sphi %s1663_s27, %s1957_s27  }
   0x4   : > { %s1688_s11 = sadd.s32 1, %s1613_s30   ;;  %s201_s12 = sadd.s32 1, %s1609_s29 }
   0x5   : > { %s198_s13 = ssub.s32 %s1613_s30, %s1688_s11  ;;  %p211_p0 = scmp.ne.s32.totalorder %s1609_s29, %s1605_s28 }
   0x6   : > { %p199_p1 = scmp.eq.s32.totalorder %s198_s13, 0  ;;  %p212_p2 = scmp.eq.s32.totalorder %s1684_s9, 1 }
   0x7   : > { %p217_p3 = scmp.ne.s32.totalorder %s1605_s28, %s1601_s27  ;;  %p218_p4 = scmp.eq.s32.totalorder %s1285_s10, 1 }
   0x8   : > { %s1699_s14 = scalar_select %p199_p1, %s1609_s29, %s201_s12  }
   0x9   : > { %p1701_p5 = por %p212_p2, %p211_p0  ;;  %p1705_p6 = por %p218_p4, %p217_p3 }
   0xa   : > { %p1288_p7 = scmp.ge.s32.totalorder %s1613_s30, 1  ;;  %p264_p8 = scmp.lt.s32.totalorder %s1613_s30, 3 }
   0xc   : > { %p265_p9 = pnand %p1288_p7, %p264_p8 }
   0xd   : > { %v1519_v0 = vld [vmem:[%s1947_s1] sm:$0xff] (!%p265_p9)   ;;  %v1615_v1 = vmov (!%p265_p9), 0.0   ;;  %v1521_v3 = vld [vmem:[%s1947_s1 + $0x8] sm:$0xff] (!%p265_p9)   ;;  %vm1616_vm0 = vmmov (!%p265_p9), 0   ;;  %p297_p10 = scmp.lt.s32.totalorder (!%p265_p9), %s1684_s9, 1  ;;  %vm358_vm1 = vcmask (!%p265_p9), 261120  }
   0xe   : > { %268 = sbr.rel (%p265_p9) target bundleno = 2304 (0x900), region = 52  ;;  %1374 = vmatprep.subr.bf16.mxu0 (!%p265_p9), %v1615_v1  ;;  %1382 = vmatprep.subr.bf16.mxu1 (!%p265_p9), %v1615_v1  ;;  %v1520_v2 = vld [vmem:[%s1947_s1 + $0x20] sm:$0xff] (!%p265_p9)   ;;  %v1522_v4 = vld [vmem:[%s1947_s1 + $0x28] sm:$0xff] (!%p265_p9)   ;;  %v1527_v8 = vld [vmem:[%s1947_s1 + $0x10] sm:$0xff] (!%p265_p9)   ;;  %vm698_vm2 = vcmask (!%p265_p9), 130048   ;;  %vm819_vm3 = vcmask (!%p265_p9), 1043456  }
   0xf   : > { %1375 = vmatpush3.bf16.msra.mxu0 (!%p265_p9), %v1519_v0  ;;  %1378 = vmatprep.mubr.msk.bf16.mxu0 (!%p265_p9), %vm1616_vm0, %v1615_v1  ;;  %v1523_v5 = vld [vmem:[%s1947_s1 + $0x40] sm:$0xff] (!%p265_p9)   ;;  %v1524_v9 = vld [vmem:[%s1947_s1 + $0x48] sm:$0xff] (!%p265_p9)   ;;  %v1528_v10 = vld [vmem:[%s1947_s1 + $0x18] sm:$0xff] (!%p265_p9)   ;;  %vm791_vm4 = vcmask (!%p265_p9), 64512   ;;  %vm1143_vm5 = vcmask (!%p265_p9), 523264   ;;  %s1333_s12 = sshll.u32 (!%p265_p9), %s1684_s9, 7 }
  0x10   : > { %1383 = vmatpush3.bf16.msra.mxu1 (!%p265_p9), %v1520_v2  ;;  %1376 = vmatprep.subr.bf16.mxu0 (!%p265_p9), %v1615_v1  ;;  %v1525_v11 = vld [vmem:[%s1947_s1 + $0x30] sm:$0xff] (!%p265_p9)   ;;  %v1526_v12 = vld [vmem:[%s1947_s1 + $0x38] sm:$0xff] (!%p265_p9)   ;;  %v1295_v15 = vld [vmem:[%s1949_s3 + $0x2] ss:$0 sm:$0xff] (!%p265_p9)  ;;  %s1903_s20 = scalar_lea.hbm (!%p265_p9), %s1954_s8, %s1333_s12 }
  0x11   : > { %1384 = vmatprep.subr.bf16.mxu1 (!%p265_p9), %v1615_v1  ;;  %1386 = vmatprep.mubr.msk.bf16.mxu1 (!%p265_p9), %vm1616_vm0, %v1615_v1  ;;  %v1529_v13 = vld [vmem:[%s1947_s1 + $0x50] sm:$0xff] (!%p265_p9)   ;;  %v1530_v14 = vld [vmem:[%s1947_s1 + $0x58] sm:$0xff] (!%p265_p9)   ;;  %v1291_v26 = vld [vmem:[%s1949_s3] ss:$0 sm:$0xff] (!%p265_p9) }
  0x12   : > { %v1299_v28 = vld [vmem:[%s1949_s3 + $0x4] ss:$0 sm:$0xff] (!%p265_p9)  ;;  %v1307_v42 = vld [vmem:[%s1949_s3 + $0x3] ss:$0 sm:$0xff] (!%p265_p9)  ;;  %v1303_v47 = vld [vmem:[%s1949_s3 + $0x1] ss:$0 sm:$0xff] (!%p265_p9) }
  0x13   : > { %1377 = vmatpush3.bf16.msra.mxu0 (!%p265_p9), %v1521_v3  ;;  %v1311_v53 = vld [vmem:[%s1949_s3 + $0x5] ss:$0 sm:$0xff] (!%p265_p9) }
  0x14   : > { %1385 = vmatpush3.bf16.msra.mxu1 (!%p265_p9), %v1522_v4  ;;  %1390 = vmatprep.subr.bf16.mxu0 (!%p265_p9), %v1615_v1 }
  0x15   : > { %s298_s25 = scalar_select %p297_p10, %s1684_s9, 1  ;;  %1398 = vmatprep.subr.bf16.mxu1 %v1615_v1 }
  0x16   : > { %s1617_s9 = smov [#allocation2]  }
  0x17   : > { %s1290_s26 = sshll.u32 %s298_s25, 3  ;;  %s1555_s23 = sshll.u32 %s1617_s9, 4  ;;  %s1556_s23 = int_to_ptr.vmem [resolvable:$false] %s1555_s23 }
  0x18   : > { %s300_s13 = scalar_lea.vmem %s1946_s0, %s1290_s26  ;;  %s294_s26 = sand.u32 1, %s1605_s28  }
  0x19   : > { %v1740_v6 = vld [vmem:[%s300_s13] sm:$0xff]  ;;  %s1289_s10 = sshll.u32 %s294_s26, 3  ;;  %s1213_s21 = scalar_lea.sflag [#allocation3], %s294_s26 }
  0x1a   : > { %v303_v7 = vpack.c.bf16 %v1740_v6, %v1740_v6  ;;  %s296_s13 = scalar_lea.vmem [#allocation2], %s1289_s10  ;;  %s1557_s24 = scalar_lea.vmem %s1556_s23, 256 }
  0x1b   : > { %s1226_s17 = sshll.u32 %s296_s13, 4  ;;  %s1905_s17 = int_to_ptr.vmem [resolvable:$true] %s1226_s17 }
  0x1c   : > { %1379 = vmatmul.mubr.msk.bf16.vlgmr.msra.gmra.mrb[0].mxu0 %vm358_vm1, %v303_v7  ;;  %1387 = vmatmul.mubr.msk.bf16.vlgmr.msra.gmra.mrb[0].mxu1 %vm358_vm1, %v303_v7  ;;  %s1551_s22 = scalar_lea.vmem %s1905_s17, 128  ;;  %p1558_p0 = scmp.lt.s32.totalorder %s1905_s17, %s1556_s23 }
  0x1d   : > { %1391 = vmatpush3.bf16.msra.mxu0 %v1523_v5  ;;  %1394 = vmatprep.mubr.msk.bf16.mxu0 %vm1616_vm0, %v1615_v1  ;;  %p1552_p11 = scmp.ne.s32.totalorder %s1905_s17, %s1551_s22  ;;  %p1559_p1 = scmp.lt.s32.totalorder %s1557_s24, %s1551_s22 }
  0x1e   : > { %1392 = vmatprep.subr.bf16.mxu0 %v1615_v1  ;;  %1399 = vmatpush3.bf16.msra.mxu1 %v1527_v8 }
  0x1f   : > { %1400 = vmatprep.subr.bf16.mxu1 %v1615_v1  ;;  %1402 = vmatprep.mubr.msk.bf16.mxu1 %vm1616_vm0, %v1615_v1  ;;  %p1553_p12 = pnand %p1552_p11, %p1701_p5  ;;  %p1560_p2 = por %p1559_p1, %p1558_p0 }
  0x21   : > { %1393 = vmatpush3.bf16.msra.mxu0 %v1524_v9  ;;  %p1554_p13 = pneg %p1553_p12 }
  0x22   : > { %1406 = vmatprep.subr.bf16.mxu0 %v1615_v1  ;;  %1401 = vmatpush3.bf16.msra.mxu1 %v1528_v10 }
  0x23   : > { %1414 = vmatprep.subr.bf16.mxu1 %v1615_v1  ;;  %p1561_p3 = pnand %p1560_p2, %p1554_p13 }
  0x24   : > { %1395 = vmatmul.mubr.msk.bf16.vlgmr.msra.gmra.mrb[4].mxu0 %vm358_vm1, %v303_v7 }
  0x25   : > { %1407 = vmatpush3.bf16.msra.mxu0 %v1525_v11  ;;  %1410 = vmatprep.mubr.msk.bf16.mxu0 %vm1616_vm0, %v1615_v1 }
  0x26   : > { %1408 = vmatprep.subr.bf16.mxu0 %v1615_v1  ;;  %1403 = vmatmul.mubr.msk.bf16.vlgmr.msra.gmra.mrb[4].mxu1 %vm358_vm1, %v303_v7 }
  0x27   : > { %1418 = vmatprep.mubr.msk.bf16.mxu1 %vm1616_vm0, %v1615_v1  ;;  %1415 = vmatpush3.bf16.msra.mxu1 %v1529_v13 }
  0x28   : > { %1416 = vmatprep.subr.bf16.mxu1 %v1615_v1 }
  0x29   : > { %1409 = vmatpush3.bf16.msra.mxu0 %v1526_v12 }
  0x2a   : > { %1422 = vmatprep.subr.bf16.mxu0 %v1615_v1 }
  0x2b   : > { %1417 = vmatpush3.bf16.msra.mxu1 %v1530_v14 }
  0x2c   : > { %1411 = vmatmul.mubr.msk.bf16.vlgmr.msra.gmra.mrb[8].mxu0 %vm358_vm1, %v303_v7  ;;  %1428 = vmatprep.subr.bf16.mxu1 %v1615_v1 }
  0x2d   : > { %1424 = vmatprep.mubr.msk.bf16.mxu0 %vm1616_vm0, %v1615_v1 }
  0x2e   : > { %1419 = vmatmul.mubr.msk.bf16.vlgmr.msra.gmra.mrb[8].mxu1 %vm358_vm1, %v303_v7 }
  0x2f   : > { %1430 = vmatprep.mubr.msk.bf16.mxu1 %vm1616_vm0, %v1615_v1 }
  0xef   : > { %v396_v16 = vpop.f32.mrb[0].mxu0  ;;  %v454_v17 = vpop.f32.mrb[0].mxu1 }
  0xf0   : > { %v455_v18 = vadd.f32 %v1295_v15, %v454_v17  ;;  %v1380_v19 = vpop.f32.mrb[1].mxu0  ;;  %v1388_v20 = vpop.f32.mrb[1].mxu1  ;;  %v397_v29 = vadd.f32 %v1291_v26, %v396_v16 }
  0xf1   : > { %v399_v21 = vpop.f32.mrb[2].mxu0  ;;  %v457_v22 = vpop.f32.mrb[2].mxu1 }
  0xf2   : > { %v519_v23 = vpack.c.bf16 %v455_v18, %v455_v18  ;;  %v1381_v24 = vpop.f32.mrb[3].mxu0  ;;  %v1389_v25 = vpop.f32.mrb[3].mxu1  ;;  %v518_v35 = vpack.c.bf16 %v397_v29, %v397_v29 }
  0xf4   : > { %v703_v27 = vsel %vm698_vm2, %v519_v23, 0 }
  0xf5   : > { %1423 = vmatpush3.bf16.xpose.msra.mxu0 %v703_v27  ;;  %v1531_v27 = vld [vmem:[%s1948_s2] sm:$0xff]  }
  0xf6   : > { %1434 = vmatprep.subr.bf16.mxu0 %v1615_v1 }
  0xf7   : > { %v512_v30 = vpop.f32.mrb[4].mxu0 }
  0xf8   : > { %v513_v31 = vadd.f32 %v1299_v28, %v512_v30  ;;  %v1396_v32 = vpop.f32.mrb[5].mxu0  ;;  %v1532_v28 = vld [vmem:[%s1948_s2 + $0x8] sm:$0xff]  }
  0xf9   : > { %v515_v33 = vpop.f32.mrb[6].mxu0  ;;  %v573_v34 = vpop.f32.mrb[4].mxu1 }
  0xfa   : > { %v520_v36 = vpack.c.bf16 %v513_v31, %v513_v31  ;;  %v1397_v37 = vpop.f32.mrb[7].mxu0  ;;  %v1404_v38 = vpop.f32.mrb[5].mxu1  ;;  %v574_v51 = vadd.f32 %v1303_v47, %v573_v34 }
  0xfb   : > { %v576_v39 = vpop.f32.mrb[6].mxu1 }
  0xfc   : > { %v821_v40 = vsel %vm819_vm3, %v520_v36, 0  ;;  %1425 = vmatmul.mubr.msk.bf16.vlgmr.msra.gmra.mrb[12].mxu0 %vm698_vm2, %v518_v35  ;;  %v1405_v41 = vpop.f32.mrb[7].mxu1  ;;  %v695_v52 = vpack.c.bf16 %v574_v51, %v574_v51 }
  0xfd   : > { %1435 = vmatpush3.bf16.msra.mxu0 %v821_v40  ;;  %1436 = vmatprep.mubr.msk.bf16.mxu0 %vm1616_vm0, %v1615_v1 }
  0xfe   : > { %1446 = vmatprep.subr.bf16.mxu0 %v1615_v1 }
  0xff   : > { %v631_v43 = vpop.f32.mrb[8].mxu0 }
 0x100   : > { %v632_v44 = vadd.f32 %v1307_v42, %v631_v43  ;;  %v1412_v45 = vpop.f32.mrb[9].mxu0  ;;  %v1009_v43 = vlaneseq }
 0x101   : > { %v634_v46 = vpop.f32.mrb[10].mxu0  ;;  %v689_v54 = vpop.f32.mrb[8].mxu1 }
 0x102   : > { %v696_v48 = vpack.c.bf16 %v632_v44, %v632_v44  ;;  %v1413_v49 = vpop.f32.mrb[11].mxu0  ;;  %v690_v55 = vadd.f32 %v1311_v53, %v689_v54  ;;  %v1420_v56 = vpop.f32.mrb[9].mxu1  ;;  %v1848_v44 = vshrl.u32 %v1009_v43, 7  ;;  %v1854_v46 = vld [vmem:[%s1952_s6] sm:$0x3f] }
 0x103   : > { %v692_v57 = vpop.f32.mrb[10].mxu1 }
 0x104   : > { %v749_v50 = vsel %vm698_vm2, %v696_v48, 0  ;;  %v697_v58 = vpack.c.bf16 %v690_v55, %v690_v55  ;;  %v1421_v59 = vpop.f32.mrb[11].mxu1  ;;  %v1011_v45 = vsub.s32 0, %v1848_v44 }
 0x105   : > { %1429 = vmatpush3.bf16.xpose.msra.mxu1 %v749_v50 }
 0x106   : > { %1440 = vmatprep.subr.bf16.mxu1 %v1615_v1  ;;  %v867_v60 = vsel %vm819_vm3, %v697_v58, 0  ;;  %v1012_v47 = vrot.slane %v1854_v46, %v1011_v45 }
 0x10c   : > { %1431 = vmatmul.mubr.msk.bf16.vlgmr.msra.gmra.mrb[12].mxu1 %vm698_vm2, %v695_v52 }
 0x10d   : > { %1442 = vmatprep.mubr.msk.bf16.mxu1 %vm1616_vm0, %v1615_v1  ;;  %1441 = vmatpush3.bf16.msra.mxu1 %v867_v60 }
 0x10e   : > { %1452 = vmatprep.subr.bf16.mxu1 %v1615_v1 }
 0x1cf   : > { %v739_v61 = vpop.f32.mrb[12].mxu0 }
 0x1d0   : > { %v1426_v62 = vpop.f32.mrb[13].mxu0  ;;  %v792_v63 = vsel %vm791_vm4, %v739_v61, -inf }
 0x1d1   : > { %793 = vmax.xlane.f32.xlu0 %v792_v63  ;;  %v742_v0 = vpop.f32.mrb[14].mxu0  ;;  %v1535_v62 = vld [vmem:[%s1951_s5] sm:$0xff]   ;;  %v1536_v63 = vld [vmem:[%s1951_s5 + $0x8] sm:$0xff]  }
 0x1d2   : > { %v1427_v2 = vpop.f32.mrb[15].mxu0 }
 0x1df   : > { %v785_v3 = vpop.f32.mrb[12].mxu1 }
 0x1e0   : > { %v1432_v4 = vpop.f32.mrb[13].mxu1  ;;  %v795_v5 = vsel %vm791_vm4, %v785_v3, -inf }
 0x1e1   : > { %v788_v7 = vpop.f32.mrb[14].mxu1  ;;  %796 = vmax.xlane.f32.xlu0 %v795_v5  ;;  %v1031_v4 = vsub.s32 1, %v1848_v44  ;;  %v1036_v5 = vsub.s32 2, %v1848_v44 }
 0x1e2   : > { %v1433_v8 = vpop.f32.mrb[15].mxu1 }
 0x1e3   : > { %v1032_v7 = vrot.slane %v1854_v46, %v1031_v4 }
 0x25e   : > { %v794_v9 = vpop.xlane.xlu0 %793 }
 0x25f   : > { %v798_v10 = vsub.f32 %v739_v61, %v794_v9  ;;  %v1533_v61 = vld [vmem:[%s1950_s4] sm:$0xff]  }
 0x261   : > { %v800_v11 = vmul.f32 1.442695, %v798_v10  ;;  %v1037_v10 = vrot.slane %v1854_v46, %v1036_v5 }
 0x263   : > { %1539 = vpow2.f32 %v800_v11 }
 0x26d   : > { %v1540_v12 = vpop.eup %1539 }
 0x26e   : > { %v797_v13 = vpop.xlane.xlu0 %796  ;;  %v804_v14 = vsel %vm791_vm4, %v1540_v12, 0.0 }
 0x26f   : > { %v799_v15 = vsub.f32 %v785_v3, %v797_v13  ;;  %805 = vadd.xlane.f32.xlu1 %v804_v14  ;;  %v1537_v14 = vld [vmem:[%s1951_s5 + $0x10] sm:$0xff]  }
 0x271   : > { %v802_v16 = vmul.f32 1.442695, %v799_v15  ;;  %v1538_v15 = vld [vmem:[%s1951_s5 + $0x18] sm:$0xff]  }
 0x273   : > { %1541 = vpow2.f32 %v802_v16  ;;  %v1323_v16 = vld [vmem:[%s1953_s7] ss:$0 sm:$0xff] }
 0x27d   : > { %v1542_v17 = vpop.eup %1541 }
 0x27e   : > { %v807_v18 = vsel %vm791_vm4, %v1542_v17, 0.0 }
 0x27f   : > { %808 = vadd.xlane.f32.xlu1 %v807_v18 }
 0x2fc   : > { %v806_v19 = vpop.xlane.xlu1 %805 }
 0x2fd   : > { %1543 = vrcp.f32 %v806_v19 }
 0x307   : > { %v1544_v20 = vpop.eup %1543 }
 0x308   : > { %v812_v21 = vmul.f32 %v1544_v20, %v1540_v12 }
 0x30a   : > { %v814_v22 = vpack.c.bf16 %v812_v21, %v812_v21 }
 0x30c   : > { %1437 = vmatmul.mubr.msk.bf16.vlgmr.msra.gmra.mrb[16].mxu0 %vm791_vm4, %v814_v22  ;;  %v809_v23 = vpop.xlane.xlu1 %808 }
 0x30d   : > { %1545 = vrcp.f32 %v809_v23  ;;  %1448 = vmatprep.mubr.msk.bf16.mxu0 %vm1616_vm0, %v1615_v1  ;;  %1447 = vmatpush3.bf16.msra.mxu0 %v1532_v28 }
 0x30e   : > { %1458 = vmatprep.subr.bf16.mxu0 %v1615_v1 }
 0x317   : > { %v1546_v24 = vpop.eup %1545 }
 0x318   : > { %v813_v25 = vmul.f32 %v1546_v24, %v1542_v17 }
 0x31a   : > { %v815_v26 = vpack.c.bf16 %v813_v25, %v813_v25 }
 0x31c   : > { %1443 = vmatmul.mubr.msk.bf16.vlgmr.msra.gmra.mrb[16].mxu1 %vm791_vm4, %v815_v26 }
 0x31d   : > { %1454 = vmatprep.mubr.msk.bf16.mxu1 %vm1616_vm0, %v1615_v1  ;;  %1453 = vmatpush3.bf16.msra.mxu1 %v1531_v27 }
 0x31e   : > { %1466 = vmatprep.subr.bf16.mxu1 %v1615_v1 }
 0x3df   : > { %v857_v29 = vpop.f32.mrb[16].mxu0 }
 0x3e0   : > { %v909_v30 = vpack.c.bf16 %v857_v29, %v857_v29  ;;  %v1438_v31 = vpop.f32.mrb[17].mxu0 }
 0x3e1   : > { %v860_v32 = vpop.f32.mrb[18].mxu0 }
 0x3e2   : > { %v1439_v33 = vpop.f32.mrb[19].mxu0  ;;  %1455 = vmatmul.mubr.msk.bf16.vlgmr.msra.gmra.mrb[20].mxu1 %vm698_vm2, %v909_v30 }
 0x3e3   : > { %1474 = vmatprep.mubr.msk.bf16.mxu1 %vm1616_vm0, %v1615_v1  ;;  %1467 = vmatpush3.bf16.msra.mxu1 %v1535_v62 }
 0x3e4   : > { %1468 = vmatprep.subr.bf16.mxu1 %v1615_v1 }
 0x3e7   : > { %1469 = vmatpush3.bf16.msra.mxu1 %v1536_v63 }
 0x3e8   : > { %1470 = vmatprep.subr.bf16.mxu1 %v1615_v1 }
 0x3eb   : > { %1471 = vmatpush3.bf16.msra.mxu1 %v1537_v14 }
 0x3ec   : > { %1472 = vmatprep.subr.bf16.mxu1 %v1615_v1 }
 0x3ef   : > { %v903_v34 = vpop.f32.mrb[16].mxu1  ;;  %1473 = vmatpush3.bf16.msra.mxu1 %v1538_v15 }
 0x3f0   : > { %v910_v35 = vpack.c.bf16 %v903_v34, %v903_v34  ;;  %v1444_v36 = vpop.f32.mrb[17].mxu1 }
 0x3f1   : > { %v906_v37 = vpop.f32.mrb[18].mxu1 }
 0x3f2   : > { %v1445_v38 = vpop.f32.mrb[19].mxu1  ;;  %1449 = vmatmul.mubr.msk.bf16.vlgmr.msra.gmra.mrb[20].mxu0 %vm698_vm2, %v910_v35 }
 0x3f3   : > { %1462 = vmatprep.mubr.msk.bf16.mxu0 %vm1616_vm0, %v1615_v1  ;;  %1459 = vmatpush3.bf16.msra.mxu0 %v1533_v61 }
 0x3f4   : > { %1460 = vmatprep.subr.bf16.mxu0 %v1615_v1  ;;  %v1117_v1 = vsub.s32 3, %v1848_v44 }
 0x3f6   : > { %v1118_v24 = vrot.slane %v1854_v46, %v1117_v1 }
 0x4b5   : > { %v1003_v39 = vpop.f32.mrb[20].mxu1 }
 0x4b6   : > { %v1456_v40 = vpop.f32.mrb[21].mxu1 }
 0x4b7   : > { %v1006_v41 = vpop.f32.mrb[22].mxu1  ;;  %v1203_v40 = vsub.s32 4, %v1848_v44 }
 0x4b8   : > { %v1457_v42 = vpop.f32.mrb[23].mxu1  ;;  %v1208_v41 = vsub.s32 5, %v1848_v44 }
 0x4b9   : > { %v1204_v42 = vrot.slane %v1854_v46, %v1203_v40 }
 0x4c5   : > { %v954_v48 = vpop.f32.mrb[20].mxu0 }
 0x4c6   : > { %v1004_v49 = vadd.f32 %v1003_v39, %v954_v48  ;;  %v1450_v50 = vpop.f32.mrb[21].mxu0 }
 0x4c7   : > { %v957_v51 = vpop.f32.mrb[22].mxu0 }
 0x4c8   : > { %v1013_v52 = vadd.f32 %v1012_v47, %v1004_v49  ;;  %v1451_v53 = vpop.f32.mrb[23].mxu0  ;;  %v1209_v47 = vrot.slane %v1854_v46, %v1208_v41 }
 0x4ca   : > { %v1014_v54 = vadd.f32 %v1013_v52, %v1740_v6  ;;  %v1534_v6 = vld [vmem:[%s1950_s4 + $0x8] sm:$0xff]  }
 0x4cb   : > { %1461 = vmatpush3.bf16.msra.mxu0 %v1534_v6 }
 0x4cc   : > { %v1015_v55 = vsel %vm358_vm1, %v1014_v54, 0.0 }
 0x4cd   : > { %1016 = vadd.xlane.f32.xlu0 %v1015_v55 }
 0x55a   : > { %v1017_v56 = vpop.xlane.xlu0 %1016 }
 0x55b   : > { %v1019_v57 = vmul.f32 0.03125, %v1017_v56 }
 0x55d   : > { %v1020_v58 = vsub.f32 %v1014_v54, %v1019_v57 }
 0x55f   : > { %v1021_v59 = vmul.f32 %v1020_v58, %v1020_v58 }
 0x561   : > { %v1022_v60 = vsel %vm358_vm1, %v1021_v59, 0.0 }
 0x562   : > { %1023 = vadd.xlane.f32.xlu1 %v1022_v60 }
 0x5ef   : > { %v1024_v0 = vpop.xlane.xlu1 %1023 }
 0x5f0   : > { %v1025_v2 = vmul.f32 0.03125, %v1024_v0 }
 0x5f2   : > { %v1026_v3 = vadd.f32 1e-05, %v1025_v2 }
 0x5f4   : > { %1547 = vrsqrt.f32 %v1026_v3 }
 0x5fe   : > { %v1548_v8 = vpop.eup %1547 }
 0x5ff   : > { %v1028_v9 = vmul.f32 %v1548_v8, %v1020_v58 }
 0x601   : > { %v1033_v11 = vmul.f32 %v1032_v7, %v1028_v9 }
 0x603   : > { %v1038_v12 = vadd.f32 %v1037_v10, %v1033_v11 }
 0x605   : > { %v1039_v13 = vpack.c.bf16 %v1038_v12, %v1038_v12 }
 0x607   : > { %1463 = vmatmul.mubr.msk.bf16.vlgmr.msra.gmra.mrb[24].mxu0 %vm358_vm1, %v1039_v13 }
 0x6da   : > { %v1099_v17 = vpop.f32.mrb[24].mxu0 }
 0x6db   : > { %v1100_v18 = vadd.f32 %v1323_v16, %v1099_v17  ;;  %v1464_v19 = vpop.f32.mrb[25].mxu0 }
 0x6dc   : > { %v1102_v20 = vpop.f32.mrb[26].mxu0 }
 0x6dd   : > { %v1105_v21 = vmax.f32 %v1100_v18, 0.0  ;;  %v1465_v22 = vpop.f32.mrb[27].mxu0 }
 0x6df   : > { %v1106_v23 = vpack.c.bf16 %v1105_v21, %v1105_v21 }
 0x6e1   : > { %1475 = vmatmul.mubr.msk.bf16.vlgmr.msra.gmra.mrb[24].mxu1 %vm1143_vm5, %v1106_v23 }
 0x7b4   : > { %v1181_v25 = vpop.f32.mrb[24].mxu1 }
 0x7b5   : > { %v1182_v26 = vadd.f32 %v1181_v25, %v1118_v24  ;;  %v1476_v27 = vpop.f32.mrb[25].mxu1 }
 0x7b6   : > { %v1184_v28 = vpop.f32.mrb[26].mxu1 }
 0x7b7   : > { %v1477_v29 = vpop.f32.mrb[27].mxu1  ;;  %v1187_v30 = vadd.f32 %v1182_v26, %v1038_v12 }
 0x7b9   : > { %v1188_v31 = vsel %vm358_vm1, %v1187_v30, 0.0 }
 0x7ba   : > { %1189 = vadd.xlane.f32.xlu0 %v1188_v31 }
 0x847   : > { %v1190_v32 = vpop.xlane.xlu0 %1189 }
 0x848   : > { %v1191_v33 = vmul.f32 0.03125, %v1190_v32 }
 0x84a   : > { %v1192_v34 = vsub.f32 %v1187_v30, %v1191_v33 }
 0x84c   : > { %v1193_v35 = vmul.f32 %v1192_v34, %v1192_v34 }
 0x84e   : > { %v1194_v36 = vsel %vm358_vm1, %v1193_v35, 0.0 }
 0x84f   : > { %1195 = vadd.xlane.f32.xlu1 %v1194_v36 }
 0x8dc   : > { %v1196_v37 = vpop.xlane.xlu1 %1195 }
 0x8dd   : > { %v1197_v38 = vmul.f32 0.03125, %v1196_v37 }
 0x8df   : > { %v1198_v39 = vadd.f32 1e-05, %v1197_v38 }
 0x8e1   : > { %1549 = vrsqrt.f32 %v1198_v39 }
 0x8eb   : > { %v1550_v43 = vpop.eup %1549 }
 0x8ec   : > { %v1200_v45 = vmul.f32 %v1550_v43, %v1192_v34 }
 0x8ee   : > { %v1205_v48 = vmul.f32 %v1204_v42, %v1200_v45 }
 0x8f0   : > { %v1210_v49 = vadd.f32 %v1209_v47, %v1205_v48 }
 0x8f2   : > { %1211 = vst.msk [vmem:[%s296_s13] sm:$0xff] %vm358_vm1, %v1210_v49 }
 0x8f3   : > { %1564 = shalt.err (!%p1561_p3)
}
 0x8f4   : > { %s1565_s25 = scalar_lea.hbm %s1903_s20, 128  ;;  %s1569_s12 = scalar_lea.hbm %s1954_s8, 256 }
 0x8f5   : > { %p1566_p4 = scmp.ne.s32.totalorder %s1903_s20, %s1565_s25  ;;  %p1570_p9 = scmp.lt.u32.totalorder %s1903_s20, %s1954_s8 }
 0x8f6   : > { %p1571_p10 = scmp.lt.u32.totalorder %s1569_s12, %s1565_s25  ;;  %p1573_p12 = scmp.lt.u32.totalorder %s1565_s25, %s1903_s20 }
 0x8f7   : > { %p1567_p7 = pnand %p1566_p4, %p1701_p5 }
 0x8f8   : > { %p1572_p11 = por %p1571_p10, %p1570_p9 }
 0x8f9   : > { %p1568_p8 = pneg %p1567_p7 }
 0x8fa   : > { %p1574_p13 = por %p1573_p12, %p1572_p11 }
 0x8fc   : > { %p1575_p0 = pnand %p1574_p13, %p1568_p8 }
 0x8fe   : > { %1578 = shalt.err (!%p1575_p0)
}
 0x8ff   : > { %1478 = dma.vmem_to_hbm [thread:$0]  (%p1701_p5), %s1905_s17, 128, %s1903_s20, %s1213_s21  }
 0x900 PF: > { %p1484_p1 = scmp.ge.s32.totalorder %s1613_s30, 2  ;;  %s1238_s19 = sand.u32 1, %s1601_s27  }
 0x901   : > { %s1239_s22 = scalar_lea.sflag [#allocation3], %s1238_s19 }
 0x902   : > { %p1481_p2 = pnand %p1484_p1, %p1705_p6 }
 0x904   : > { %1596 = dma.done.wait (!%p1481_p2), %s1239_s22, 128  }
 0x905   : > { %1598 = vsyncadd (!%p1481_p2), %s1239_s22, 4294967168  ;;  %p18_p3 = scmp.ge.s32.totalorder %s1688_s11, 4   ;;  %s1957_s27 = smov %s1605_s28 }
 0x906   : > { %s1958_s28 = smov %s1609_s29  ;;  %s1959_s29 = smov %s1699_s14 }
 0x907   : > { %s1960_s30 = smov %s1688_s11  ;;  %20 = sbr.rel (!%p18_p3) target bundleno = 3 (0x3), region = 87 }
 0x90e   :  { %1244 = vsyncpa [#allocation3], 1 }
 0x90f   :  { %1246 = vsyncpa [#allocation3 + $0x1], 1 }

</bundles_post_ra>
